<compile_context>
chip_gen: v7x
topology: tpu7x:2x2x1
jax: 0.10.0
libtpu: 0.0.40
codegen_flags: <defaults>
</compile_context>

<pallas_src>
import functools

import jax
import jax.numpy as jnp
from jax.experimental import pallas as pl
from jax.experimental.pallas import tpu as pltpu

F_PAD = 128  # lane-dense padded feature width (holds in/hidden/out features)


def _gcn_kernel(x_ref, adj_ref, w_ref, b_ref, o_ref, h_ref, *, tm, n_layers):
    """One grid step = one layer (axis 0) x one adj row block (axis 1).

    h_ref is a (2, N_pad, F_PAD) bf16 ping-pong scratch holding the full
    activation of the previous layer (read) and the current layer (written
    row-block by row-block).
    """
    l = pl.program_id(0)                  # layer index (outer, sequential)
    i = pl.program_id(1)                  # adj row-block index (inner)
    row = pl.multiple_of(i * tm, tm)

    # Seed the ping buffer with the padded input features on the first step.
    @pl.when((l == 0) & (i == 0))
    def _():
        h_ref[0] = x_ref[...]

    parity = l % 2
    h_in = h_ref[parity]                  # (N_pad, F_PAD) bf16, full activation

    # (adj_blk @ h) @ W  ==  adj_blk @ (h @ W): re-associated so each row
    # block is independent within a layer; both matmuls accumulate in f32.
    tmp = jnp.dot(adj_ref[...], h_in, preferred_element_type=jnp.float32)
    out = jnp.dot(tmp.astype(jnp.bfloat16), w_ref[...],
                  preferred_element_type=jnp.float32)
    out = out + b_ref[...]                # f32 bias

    is_last = l == n_layers - 1
    act = jnp.where(is_last, out, jnp.maximum(out, 0.0))   # ReLU except last
    o_ref[...] = act                      # final layer's sweep wins in HBM

    act_bf = act.astype(jnp.bfloat16)

    @pl.when(parity == 0)
    def _():
        h_ref[1, pl.ds(row, tm), :] = act_bf

    @pl.when(parity == 1)
    def _():
        h_ref[0, pl.ds(row, tm), :] = act_bf


def _vmem_limit_bytes():
    """~75% of physical VMEM (96 MiB on v5e/v6e, 48 MiB on v7x)."""
    try:
        cap = getattr(pltpu.get_tpu_info(), "vmem_capacity_bytes", None)
        if cap:
            return int(cap) * 3 // 4
    except Exception:
        pass
    return 48 << 20  # conservative default that fits every generation


def gcn_forward(params, x, adj):
    """Full GCN forward as one fused Pallas kernel (eval-mode dropout)."""
    n, f_in = x.shape
    n_layers = len(params)
    f_out_true = params[-1][0].shape[1]

    assert f_in <= F_PAD, f"in_features {f_in} exceeds F_PAD={F_PAD}"
    for (w, _) in params:
        assert w.shape[0] <= F_PAD and w.shape[1] <= F_PAD, (
            f"layer dims {w.shape} exceed F_PAD={F_PAD}")

    # ---- wrapper-side zero padding + bf16 casts ----------------------------
    n_pad = ((n + 127) // 128) * 128
    tm = 128
    for cand in (1024, 512, 256, 128):    # largest row tile dividing n_pad
        if n_pad % cand == 0:
            tm = cand
            break
    nb = n_pad // tm

    x_p = jnp.zeros((n_pad, F_PAD), jnp.bfloat16)
    x_p = x_p.at[:n, :f_in].set(x.astype(jnp.bfloat16))
    adj_p = jnp.zeros((n_pad, n_pad), jnp.bfloat16)
    adj_p = adj_p.at[:n, :n].set(adj.astype(jnp.bfloat16))

    w_list, b_list = [], []
    for (w, b) in params:
        fi, fo = w.shape
        w_list.append(jnp.zeros((F_PAD, F_PAD), jnp.bfloat16)
                      .at[:fi, :fo].set(w.astype(jnp.bfloat16)))
        b_list.append(jnp.zeros((1, F_PAD), jnp.float32).at[0, :fo].set(b))
    w_stack = jnp.stack(w_list)           # (L, F_PAD, F_PAD) bf16
    b_stack = jnp.stack(b_list)           # (L, 1, F_PAD)     f32

    flops = 2 * n_layers * (n_pad * n_pad * F_PAD + n_pad * F_PAD * F_PAD)
    bytes_accessed = (
        n_layers * n_pad * n_pad * 2          # adj streamed once per layer
        + n_pad * F_PAD * 2                   # x (fetched once)
        + n_layers * F_PAD * F_PAD * 2        # weights
        + n_layers * F_PAD * 4                # biases
        + n_layers * n_pad * F_PAD * 4)       # output writebacks
    cost = pl.CostEstimate(flops=flops, transcendentals=0,
                           bytes_accessed=bytes_accessed)

    kernel = functools.partial(_gcn_kernel, tm=tm, n_layers=n_layers)

    out_p = pl.pallas_call(
        kernel,
        out_shape=jax.ShapeDtypeStruct((n_pad, F_PAD), jnp.float32),
        grid_spec=pltpu.PrefetchScalarGridSpec(
            num_scalar_prefetch=0,
            grid=(n_layers, nb),
            in_specs=[
                pl.BlockSpec((n_pad, F_PAD), lambda l, i: (0, 0)),           # x
                pl.BlockSpec((tm, n_pad), lambda l, i: (i, 0)),              # adj rows
                pl.BlockSpec((None, F_PAD, F_PAD), lambda l, i: (l, 0, 0)),  # W_l
                pl.BlockSpec((None, 1, F_PAD), lambda l, i: (l, 0, 0)),      # b_l
            ],
            out_specs=pl.BlockSpec((tm, F_PAD), lambda l, i: (i, 0)),
            scratch_shapes=[pltpu.VMEM((2, n_pad, F_PAD), jnp.bfloat16)],
        ),
        compiler_params=pltpu.CompilerParams(
            dimension_semantics=("arbitrary", "arbitrary"),
            vmem_limit_bytes=_vmem_limit_bytes(),
        ),
        cost_estimate=cost,
    )(x_p, adj_p, w_stack, b_stack)

    # slice off padded rows and padded feature columns
    return out_p[:n, :f_out_true]


def init_gcn_params(key, in_features, hidden_features, out_features, n_layers):
    """Deterministic Kipf-style uniform init for each GraphConvolution layer."""
    dims = (
        [(in_features, hidden_features)]
        + [(hidden_features, hidden_features)] * (n_layers - 2)
        + [(hidden_features, out_features)]
    )
    params = []
    for (fi, fo) in dims:
        key, kw, kb = jax.random.split(key, 3)
        bound = 1.0 / jnp.sqrt(jnp.float32(fo))
        w = jax.random.uniform(kw, (fi, fo), jnp.float32, -bound, bound)
        b = jax.random.uniform(kb, (fo,), jnp.float32, -bound, bound)
        params.append((w, b))
    return params


def gcn_reference(params, x, adj):
    """Pure-JAX f32 reference of the same forward for a sanity check."""
    for (w, b) in params[:-1]:
        x = jnp.maximum(adj @ (x @ w) + b, 0.0)
    w, b = params[-1]
    return adj @ (x @ w) + b


if __name__ == "__main__":
    key = jax.random.PRNGKey(0)

    def make_case(case_key, n, in_f):
        k_x, k_adj = jax.random.split(case_key)
        x = jax.random.normal(k_x, (n, in_f), jnp.float32)
        # symmetric row-normalized-ish adjacency with self loops
        a = jax.random.uniform(k_adj, (n, n), jnp.float32)
        a = (a + a.T) * 0.5 + jnp.eye(n, dtype=jnp.float32)
        adj = a / jnp.sum(a, axis=1, keepdims=True)
        return x, adj

    IN_F, HID_F, OUT_F, N_LAYERS = 16, 32, 8, 3
    k_p, k_a, k_b = jax.random.split(key, 3)
    params = init_gcn_params(k_p, IN_F, HID_F, OUT_F, N_LAYERS)

    # Case 1: N=64 (padded to 128, single adj row block per layer)
    x1, adj1 = make_case(k_a, 64, IN_F)
    out1 = jax.block_until_ready(gcn_forward(params, x1, adj1))
    ref1 = gcn_reference(params, x1, adj1)
    assert out1.shape == (64, OUT_F)
    assert jnp.allclose(out1, ref1, atol=5e-2, rtol=5e-2), \
        float(jnp.max(jnp.abs(out1 - ref1)))

    # Case 2: N=300 (padded to 384 -> 3 streamed adj row blocks per layer,
    # exercises the ping-pong scratch / multi-block path)
    x2, adj2 = make_case(k_b, 300, IN_F)
    out2 = jax.block_until_ready(gcn_forward(params, x2, adj2))
    ref2 = gcn_reference(params, x2, adj2)
    assert out2.shape == (300, OUT_F)
    assert jnp.allclose(out2, ref2, atol=5e-2, rtol=5e-2), \
        float(jnp.max(jnp.abs(out2 - ref2)))

    print("KERNEL_OK")
</pallas_src>

<mosaic_0001>
module attributes {stable_mosaic.version = 11 : i64} {
  func.func @_gcn_kernel(%arg0: i32, %arg1: i32, %arg2: memref<128x128xbf16, #tpu.memory_space<vmem>>, %arg3: memref<128x128xbf16, #tpu.memory_space<vmem>>, %arg4: memref<1x128x128xbf16, #tpu.memory_space<vmem>>, %arg5: memref<1x1x128xf32, #tpu.memory_space<vmem>>, %arg6: memref<128x128xf32, #tpu.memory_space<vmem>>, %arg7: memref<2x128x128xbf16, #tpu.memory_space<vmem>>) attributes {dimension_semantics = [#tpu.dimension_semantics<arbitrary>, #tpu.dimension_semantics<arbitrary>], iteration_bounds = array<i64: 3, 1>, scalar_prefetch = 0 : i64, scratch_operands = 1 : i64, tpu.core_type = #tpu.core_type<tc>, window_params = [{pipeline_mode = #tpu.pipeline_mode<synchronous>, transform_indices = @transform_0, window_bounds = array<i64: 128, 128>}, {transform_indices = @transform_1, window_bounds = array<i64: 128, 128>}, {transform_indices = @transform_2, window_bounds = array<i64: 1, 128, 128>}, {transform_indices = @transform_3, window_bounds = array<i64: 1, 1, 128>}, {transform_indices = @transform_4, window_bounds = array<i64: 128, 128>}]} {
    %c128_i32 = arith.constant 128 : i32
    %0 = arith.muli %arg1, %c128_i32 : i32
    %1 = tpu.assume_multiple %0, 128 : i32
    %c0_i32 = arith.constant 0 : i32
    %2 = arith.cmpi eq, %arg0, %c0_i32 : i32
    %c0_i32_0 = arith.constant 0 : i32
    %3 = arith.cmpi eq, %arg1, %c0_i32_0 : i32
    %4 = arith.andi %2, %3 : i1
    %5 = arith.extui %4 : i1 to i32
    %c0_i32_1 = arith.constant 0 : i32
    %6 = arith.cmpi ne, %5, %c0_i32_1 : i32
    scf.if %6 {
      %c0_24 = arith.constant 0 : index
      %c0_25 = arith.constant 0 : index
      %42 = vector.load %arg2[%c0_24, %c0_25] : memref<128x128xbf16, #tpu.memory_space<vmem>>, vector<128x128xbf16>
      %c0_26 = arith.constant 0 : index
      %c0_27 = arith.constant 0 : index
      %c0_28 = arith.constant 0 : index
      %43 = vector.load %arg7[%c0_26, %c0_27, %c0_28] : memref<2x128x128xbf16, #tpu.memory_space<vmem>>, vector<1x128x128xbf16>
      %44 = vector.shape_cast %43 : vector<1x128x128xbf16> to vector<128x128xbf16>
      %45 = vector.shape_cast %42 : vector<128x128xbf16> to vector<1x128x128xbf16>
      tpu.vector_store %arg7[%c0_26, %c0_27, %c0_28], %45 {strides = array<i32>} : memref<2x128x128xbf16, #tpu.memory_space<vmem>>, vector<1x128x128xbf16>,
    } else {
    }
    %c2_i32 = arith.constant 2 : i32
    %c0_i32_2 = arith.constant 0 : i32
    %7 = arith.cmpi eq, %c2_i32, %c0_i32_2 : i32
    %c1_i32 = arith.constant 1 : i32
    %8 = arith.select %7, %c1_i32, %c2_i32 : i32
    %9 = arith.remsi %arg0, %8 : i32
    %c0_i32_3 = arith.constant 0 : i32
    %10 = arith.cmpi ne, %9, %c0_i32_3 : i32
    %c0_i32_4 = arith.constant 0 : i32
    %11 = arith.cmpi slt, %9, %c0_i32_4 : i32
    %c0_i32_5 = arith.constant 0 : i32
    %12 = arith.cmpi slt, %8, %c0_i32_5 : i32
    %13 = arith.xori %11, %12 : i1
    %14 = arith.andi %13, %10 : i1
    %15 = arith.addi %9, %8 : i32
    %16 = arith.select %14, %15, %9 : i32
    %17 = arith.index_cast %16 : i32 to index
    %c0 = arith.constant 0 : index
    %c0_6 = arith.constant 0 : index
    %18 = vector.load %arg7[%17, %c0, %c0_6] : memref<2x128x128xbf16, #tpu.memory_space<vmem>>, vector<1x128x128xbf16>
    %19 = vector.shape_cast %18 : vector<1x128x128xbf16> to vector<128x128xbf16>
    %c0_7 = arith.constant 0 : index
    %c0_8 = arith.constant 0 : index
    %20 = vector.load %arg3[%c0_7, %c0_8] : memref<128x128xbf16, #tpu.memory_space<vmem>>, vector<128x128xbf16>
    %cst = arith.constant dense<0.000000e+00> : vector<128x128xf32>
    %21 = tpu.matmul %20, %19, %cst {dimension_numbers = #tpu.dot_dimension_numbers<[1], [0], [0], [1], [0, 0, 1, 1], [], []>} : vector<128x128xbf16>, vector<128x128xbf16>, vector<128x128xf32> -> vector<128x128xf32>
    %22 = arith.truncf %21 : vector<128x128xf32> to vector<128x128xbf16>
    %c0_9 = arith.constant 0 : index
    %c0_10 = arith.constant 0 : index
    %c0_11 = arith.constant 0 : index
    %23 = vector.load %arg4[%c0_9, %c0_10, %c0_11] : memref<1x128x128xbf16, #tpu.memory_space<vmem>>, vector<1x128x128xbf16>
    %24 = vector.shape_cast %23 : vector<1x128x128xbf16> to vector<128x128xbf16>
    %cst_12 = arith.constant dense<0.000000e+00> : vector<128x128xf32>
    %25 = tpu.matmul %22, %24, %cst_12 {dimension_numbers = #tpu.dot_dimension_numbers<[1], [0], [0], [1], [0, 0, 1, 1], [], []>} : vector<128x128xbf16>, vector<128x128xbf16>, vector<128x128xf32> -> vector<128x128xf32>
    %c0_13 = arith.constant 0 : index
    %c0_14 = arith.constant 0 : index
    %c0_15 = arith.constant 0 : index
    %26 = vector.load %arg5[%c0_13, %c0_14, %c0_15] : memref<1x1x128xf32, #tpu.memory_space<vmem>>, vector<1x1x128xf32>
    %27 = vector.shape_cast %26 : vector<1x1x128xf32> to vector<1x128xf32>
    %28 = vector.broadcast %27 : vector<1x128xf32> to vector<128x128xf32>
    %29 = arith.addf %25, %28 : vector<128x128xf32>
    %c2_i32_16 = arith.constant 2 : i32
    %30 = arith.cmpi eq, %arg0, %c2_i32_16 : i32
    %cst_17 = arith.constant 0.000000e+00 : f32
    %31 = vector.broadcast %cst_17 : f32 to vector<128x128xf32>
    %32 = arith.maximumf %29, %31 : vector<128x128xf32>
    %33 = arith.select %30, %29, %32 : vector<128x128xf32>
    %c0_18 = arith.constant 0 : index
    %c0_19 = arith.constant 0 : index
    %34 = vector.load %arg6[%c0_18, %c0_19] : memref<128x128xf32, #tpu.memory_space<vmem>>, vector<128x128xf32>
    tpu.vector_store %arg6[%c0_18, %c0_19], %33 {strides = array<i32>} : memref<128x128xf32, #tpu.memory_space<vmem>>, vector<128x128xf32>,
    %35 = arith.truncf %33 : vector<128x128xf32> to vector<128x128xbf16>
    %c0_i32_20 = arith.constant 0 : i32
    %36 = arith.cmpi eq, %16, %c0_i32_20 : i32
    %37 = arith.extui %36 : i1 to i32
    %c0_i32_21 = arith.constant 0 : i32
    %38 = arith.cmpi ne, %37, %c0_i32_21 : i32
    scf.if %38 {
      %c1 = arith.constant 1 : index
      %42 = arith.index_cast %1 : i32 to index
      %c0_24 = arith.constant 0 : index
      %43 = vector.load %arg7[%c1, %42, %c0_24] : memref<2x128x128xbf16, #tpu.memory_space<vmem>>, vector<1x128x128xbf16>
      %44 = vector.shape_cast %43 : vector<1x128x128xbf16> to vector<128x128xbf16>
      %45 = vector.shape_cast %35 : vector<128x128xbf16> to vector<1x128x128xbf16>
      tpu.vector_store %arg7[%c1, %42, %c0_24], %45 {strides = array<i32>} : memref<2x128x128xbf16, #tpu.memory_space<vmem>>, vector<1x128x128xbf16>,
    } else {
    }
    %c1_i32_22 = arith.constant 1 : i32
    %39 = arith.cmpi eq, %16, %c1_i32_22 : i32
    %40 = arith.extui %39 : i1 to i32
    %c0_i32_23 = arith.constant 0 : i32
    %41 = arith.cmpi ne, %40, %c0_i32_23 : i32
    scf.if %41 {
      %c0_24 = arith.constant 0 : index
      %42 = arith.index_cast %1 : i32 to index
      %c0_25 = arith.constant 0 : index
      %43 = vector.load %arg7[%c0_24, %42, %c0_25] : memref<2x128x128xbf16, #tpu.memory_space<vmem>>, vector<1x128x128xbf16>
      %44 = vector.shape_cast %43 : vector<1x128x128xbf16> to vector<128x128xbf16>
      %45 = vector.shape_cast %35 : vector<128x128xbf16> to vector<1x128x128xbf16>
      tpu.vector_store %arg7[%c0_24, %42, %c0_25], %45 {strides = array<i32>} : memref<2x128x128xbf16, #tpu.memory_space<vmem>>, vector<1x128x128xbf16>,
    } else {
    }
    return
  }
  func.func @transform_0(%arg0: i32, %arg1: i32) -> (i32, i32) {
    %c0_i32 = arith.constant 0 : i32
    %c0_i32_0 = arith.constant 0 : i32
    %c0_i32_1 = arith.constant 0 : i32
    return %c0_i32, %c0_i32_0 : i32, i32
  }
  func.func @transform_1(%arg0: i32, %arg1: i32) -> (i32, i32) {
    %c0_i32 = arith.constant 0 : i32
    %c0_i32_0 = arith.constant 0 : i32
    return %arg1, %c0_i32 : i32, i32
  }
  func.func @transform_2(%arg0: i32, %arg1: i32) -> (i32, i32, i32) {
    %c0_i32 = arith.constant 0 : i32
    %c0_i32_0 = arith.constant 0 : i32
    %c0_i32_1 = arith.constant 0 : i32
    return %arg0, %c0_i32, %c0_i32_0 : i32, i32, i32
  }
  func.func @transform_3(%arg0: i32, %arg1: i32) -> (i32, i32, i32) {
    %c0_i32 = arith.constant 0 : i32
    %c0_i32_0 = arith.constant 0 : i32
    %c0_i32_1 = arith.constant 0 : i32
    return %arg0, %c0_i32, %c0_i32_0 : i32, i32, i32
  }
  func.func @transform_4(%arg0: i32, %arg1: i32) -> (i32, i32) {
    %c0_i32 = arith.constant 0 : i32
    %c0_i32_0 = arith.constant 0 : i32
    return %arg1, %c0_i32 : i32, i32
  }
}

</mosaic_0001>

<bundles_post_ra>
// kernel: tpu_custom_call.1
= control target key start
LH: loop header
LB: loop body
LE: loop exit
PB: predicated region body
PF: predicated region fallthrough
CT: control target
= control target key end

     0   :  { %9 = vsyncpa [#allocation4], 0  ;;  %s1716_s0 = inlined_call_operand.hbm [shape: bf16[128,128], index: 0, kind: input, shape index: {}]   ;;  %s1717_s1 = inlined_call_operand.hbm [shape: bf16[128,128], index: 1, kind: input, shape index: {}]   ;;  %s1718_s2 = inlined_call_operand.hbm [shape: bf16[3,128,128], index: 2, kind: input, shape index: {}]   ;;  %s1719_s3 = inlined_call_operand.vmem [shape: f32[3,1,128], index: 3, kind: input, shape index: {}]   ;;  %s1720_s4 = inlined_call_operand.hbm [shape: f32[128,128], index: 4, kind: output, shape index: {}]  }
   0x1   :  { %10 = vsyncpa [#allocation7], 0 }
   0x2   :  { %11 = vsyncpa [#allocation5], 0  ;;  %s1391_s15 = smov 0   ;;  %s1393_s16 = smov 0  }
   0x3   :  { %s1395_s17 = smov 0   ;;  %s1397_s18 = smov 0  }
   0x4   :  { %s1399_s19 = smov 0   ;;  %s1401_s20 = smov 0  }
   0x5 LB: > { %s1420_s21 = sadd.s32 4294967295, %s1356_s20   ;;  %p90_p0 = scmp.ne.s32.totalorder %s1344_s17, %s1340_s16  ;;  %s1356_s20 = sphi %s1401_s20, %s17_s20   ;;  %s1352_s19 = sphi %s1399_s19, %s1742_s19   ;;  %s1348_s18 = sphi %s1397_s18, %s1741_s18   ;;  %s1344_s17 = sphi %s1395_s17, %s1740_s17   ;;  %s1340_s16 = sphi %s1393_s16, %s1739_s16   ;;  %s1336_s15 = sphi %s1391_s15, %s1738_s15  }
   0x6   : > { %p91_p1 = scmp.eq.s32.totalorder %s1356_s20, 0  ;;  %p96_p2 = scmp.ne.s32.totalorder %s1340_s16, %s1336_s15 }
   0x7   : > { %p1721_p3 = scmp.eq.s32.totalorder %s1420_s21, 0  ;;  %p916_p4 = scmp.ge.s32.totalorder %s1356_s20, 1 }
   0x8   : > { %p92_p5 = por %p91_p1, %p90_p0  ;;  %p159_p6 = scmp.lt.s32.totalorder %s1356_s20, 4 }
   0x9   : > { %p1431_p7 = por %p1721_p3, %p96_p2  ;;  %s1358_s24 = smov [#allocation3]  }
   0xa   : > { %p1435_p8 = pnand %p916_p4, %p159_p6  ;;  %s171_s25 = sshll.u32 %s1358_s24, 4  ;;  %s172_s25 = int_to_ptr.vmem [resolvable:$true] %s171_s25 }
   0xb   : > { %s1725_s22 = scalar_select %p1431_p7, 1, 0 }
   0xc   : > { %s1726_s23 = scalar_select %p1435_p8, 1, 0 }
   0xd   : > { %p1085_p9 = pneg %p1435_p8  ;;  %p1098_p11 = scmp.lt.s32.totalorder %s1356_s20, 3 }
   0xe   : > { %s1182_s30 = scalar_lea.hbm %s1716_s0, 1024 }
   0xf   : > { %p1443_p10 = pnand %p1085_p9, %p1721_p3  ;;  %p1448_p12 = pnand %p1098_p11, %p92_p5 }
  0x10   : > { %p1183_p13 = scmp.ne.s32.totalorder %s1716_s0, %s1182_s30  ;;  %p1189_p4 = scmp.lt.u32.totalorder %s1182_s30, %s1716_s0 }
  0x11   : > { %s1728_s27 = scalar_select %p1448_p12, 1, 0 }
  0x12   : > { %p1184_p0 = pneg %p1443_p10 }
  0x14   : > { %p1185_p1 = pnand %p1184_p0, %p1183_p13 }
  0x16   : > { %p1186_p2 = pneg %p1185_p1 }
  0x18   : > { %p1191_p5 = pnand %p1189_p4, %p1186_p2 }
  0x1a   : > { %1194 = shalt.err (!%p1191_p5)
}
  0x1b   : > { %s1195_s9 = scalar_lea.vmem %s172_s25, 1024  ;;  %p1203_p3 = scmp.lt.s32.totalorder %s172_s25, %s172_s25 }
  0x1c   : > { %p1196_p6 = scmp.ne.s32.totalorder %s172_s25, %s1195_s9  ;;  %p1204_p7 = scmp.lt.s32.totalorder %s1195_s9, %s1195_s9 }
  0x1e   : > { %p1198_p9 = pnand %p1196_p6, %p1184_p0  ;;  %p1205_p8 = por %p1204_p7, %p1203_p3 }
  0x20   : > { %p1199_p11 = pneg %p1198_p9 }
  0x22   : > { %p1206_p12 = pnand %p1205_p8, %p1199_p11 }
  0x24   : > { %1209 = shalt.err (!%p1206_p12)
}
  0x25   : > { %s1359_s10 = smov 64   ;;  %s1360_s11 = smov 4  }
  0x26   : > { %1088 = dma.hbm_to_vmem [thread:$0]  (!%p1443_p10), %s1716_s0, 1024, %s172_s25, [#allocation4], %s1359_s10, %s1359_s10, %s1360_s11  }
  0x27   : > { %s1361_s14 = smov [#allocation6]   ;;  %s1210_s29 = scalar_lea.hbm %s1717_s1, 1024 }
  0x28   : > { %s187_s15 = sshll.u32 %s1361_s14, 4  ;;  %p1211_p3 = scmp.ne.s32.totalorder %s1717_s1, %s1210_s29  ;;  %s188_s15 = int_to_ptr.vmem [resolvable:$true] %s187_s15 }
  0x29   : > { %p1217_p12 = scmp.lt.u32.totalorder %s1210_s29, %s1717_s1 }
  0x2a   : > { %p1213_p7 = pnand %p1211_p3, %p1184_p0 }
  0x2c   : > { %p1214_p8 = pneg %p1213_p7 }
  0x2e   : > { %p1219_p13 = pnand %p1217_p12, %p1214_p8 }
  0x30   : > { %1222 = shalt.err (!%p1219_p13)
}
  0x31   : > { %s1223_s25 = scalar_lea.vmem %s188_s15, 1024  ;;  %p1231_p5 = scmp.lt.s32.totalorder %s188_s15, %s188_s15 }
  0x32   : > { %p1224_p1 = scmp.ne.s32.totalorder %s188_s15, %s1223_s25  ;;  %p1232_p6 = scmp.lt.s32.totalorder %s1223_s25, %s1223_s25 }
  0x34   : > { %p1226_p2 = pnand %p1224_p1, %p1184_p0  ;;  %p1233_p9 = por %p1232_p6, %p1231_p5 }
  0x36   : > { %p1227_p4 = pneg %p1226_p2 }
  0x38   : > { %p1234_p11 = pnand %p1233_p9, %p1227_p4 }
  0x3a   : > { %1237 = shalt.err (!%p1234_p11)
}
  0x3b   : > { %1091 = dma.hbm_to_vmem [thread:$0]  (!%p1443_p10), %s1717_s1, 1024, %s188_s15, [#allocation7], %s1359_s10, %s1359_s10, %s1360_s11  }
  0x3c   : > { %s29_s12 = sadd.s32 1, %s1352_s19  ;;  %s83_s13 = sadd.s32 1, %s1344_s17 }
  0x3d   : > { %p31_p0 = scmp.ge.s32.totalorder %s29_s12, 3  ;;  %s201_s14 = sand.u32 1, %s1356_s20  }
  0x3e   : > { %s203_s26 = sand.u32 1, %s1344_s17   ;;  %s972_s28 = sshll.u32 %s1352_s19, 10 }
  0x3f   : > { %s1744_s12 = smov (%p31_p0, %s29_s12), 0  ;;  %s920_s24 = sshll.u32 %s203_s26, 6 }
  0x40   : > { %s80_s29 = ssub.s32 %s1352_s19, %s1744_s12  ;;  %s1512_s6 = scalar_lea.hbm %s1718_s2, %s972_s28 }
  0x41   : > { %p81_p3 = scmp.eq.s32.totalorder %s80_s29, 0  ;;  %s205_s15 = scalar_lea.vmem [#allocation8], %s920_s24 }
  0x42   : > { %s212_s7 = sshll.u32 %s205_s15, 4  ;;  %s1519_s8 = scalar_lea.sflag [#allocation4], %s201_s14  ;;  %s1517_s7 = int_to_ptr.vmem [resolvable:$true] %s212_s7 }
  0x43   : > { %s1515_s25 = scalar_select %p81_p3, %s1344_s17, %s83_s13  }
  0x44   : > { %s1238_s9 = scalar_lea.hbm %s1512_s6, 1024  ;;  %p1729_p7 = scmp.ne.s32.totalorder %s1728_s27, 0 }
  0x45   : > { %p1239_p10 = scmp.ne.s32.totalorder %s1512_s6, %s1238_s9  ;;  %s1243_s29 = scalar_lea.hbm %s1718_s2, 3072 }
  0x46   : > { %p1240_p8 = pneg %p1729_p7  ;;  %p1244_p1 = scmp.lt.u32.totalorder %s1512_s6, %s1718_s2 }
  0x47   : > { %p1245_p2 = scmp.lt.u32.totalorder %s1243_s29, %s1238_s9  ;;  %p1247_p5 = scmp.lt.u32.totalorder %s1238_s9, %s1512_s6 }
  0x48   : > { %p1241_p12 = pnand %p1240_p8, %p1239_p10 }
  0x49   : > { %p1246_p4 = por %p1245_p2, %p1244_p1 }
  0x4a   : > { %p1242_p13 = pneg %p1241_p12 }
  0x4b   : > { %p1248_p6 = por %p1247_p5, %p1246_p4 }
  0x4d   : > { %p1249_p9 = pnand %p1248_p6, %p1242_p13 }
  0x4f   : > { %1252 = shalt.err (!%p1249_p9)
}
  0x50   : > { %s1253_s13 = scalar_lea.vmem %s1517_s7, 1024  ;;  %s1362_s14 = smov [#allocation8]  }
  0x51   : > { %p1254_p11 = scmp.ne.s32.totalorder %s1517_s7, %s1253_s13  ;;  %s1258_s5 = sshll.u32 %s1362_s14, 4  ;;  %s1259_s5 = int_to_ptr.vmem [resolvable:$false] %s1258_s5 }
  0x52   : > { %s1260_s15 = scalar_lea.vmem %s1259_s5, 2048  ;;  %p1261_p10 = scmp.lt.s32.totalorder %s1517_s7, %s1259_s5 }
  0x53   : > { %p1256_p0 = pnand %p1254_p11, %p1240_p8  ;;  %p1262_p12 = scmp.lt.s32.totalorder %s1260_s15, %s1253_s13 }
  0x55   : > { %p1257_p3 = pneg %p1256_p0  ;;  %p1263_p1 = por %p1262_p12, %p1261_p10 }
  0x57   : > { %p1264_p2 = pnand %p1263_p1, %p1257_p3 }
  0x59   : > { %1267 = shalt.err (!%p1264_p2)
}
  0x5a   : > { %1095 = dma.hbm_to_vmem [thread:$0]  (!%p1729_p7), %s1512_s6, 1024, %s1517_s7, %s1519_s8, %s1359_s10, %s1359_s10, %s1360_s11  }
  0x5b   : > { %p1730_p8 = scmp.ne.s32.totalorder %s1726_s23, 0 }
  0x5c   : > { %p1731_p13 = scmp.eq.s32.totalorder (!%p1730_p8), %s1420_s21, 0 }
  0x5d   : > { %230 = sbr.rel (%p1730_p8) target bundleno = 663 (0x297), region = 36 }
  0x64   : > { %1319 = dma.done.wait (%p1731_p13), [#allocation4], 1024   ;;  %p1732_p4 = pmov %p1731_p13 }
  0x66   : > { %1321 = vsyncadd (%p1732_p4), [#allocation4], 4294966272  ;;  %p1733_p5 = pmov %p1732_p4 }
  0x67   : > { %p1734_p6 = pmov %p1732_p4 }
  0x68   : > { %1323 = dma.done.wait (%p1733_p5), [#allocation7], 1024  }
  0x69   : > { %1325 = vsyncadd (%p1734_p6), [#allocation7], 4294966272  ;;  %s240_s27 = sand.u32 1, %s1420_s21   ;;  %s242_s10 = sand.u32 1, %s1340_s16  }
  0x6a   : > { %s926_s11 = sshll.u32 %s242_s10, 6  ;;  %s241_s23 = scalar_lea.sflag [#allocation4], %s240_s27 }
  0x6b   : > { %s1562_s6 = scalar_lea.vmem [#allocation8], %s926_s11  ;;  %p1735_p7 = scmp.ne.s32.totalorder %s1725_s22, 0 }
  0x6d   : > { %1327 = dma.done.wait (%p1735_p7), %s241_s23, 1024  }
  0x6e   : > { %1329 = vsyncadd (%p1735_p7), %s241_s23, 4294966272  ;;  %p268_p9 = scmp.lt.s32.totalorder %s1348_s18, 2  ;;  %p274_p11 = scmp.eq.s32.totalorder %s1348_s18, 0 }
  0x6f   : > { %v1158_v0 = vld [vmem:[#allocation3] sm:$0xff] (%p274_p11)   ;;  %v1159_v1 = vld [vmem:[#allocation3 + $0x8] sm:$0xff] (%p274_p11)   ;;  %v1160_v2 = vld [vmem:[#allocation3 + $0x10] sm:$0xff] (%p274_p11)  }
  0x70   : > { %s1571_s7 = scalar_select %p268_p9, %s1348_s18, 2 }
  0x71   : > { %279 = sbr.rel (!%p274_p11) target bundleno = 120 (0x78), region = 52  ;;  %344 = vst [vmem:[#allocation2] sm:$0xff] (%p274_p11), %v1158_v0  ;;  %345 = vst [vmem:[#allocation2 + $0x8] sm:$0xff] (%p274_p11), %v1159_v1  ;;  %v1161_v3 = vld [vmem:[#allocation3 + $0x18] sm:$0xff] (%p274_p11)   ;;  %v1162_v4 = vld [vmem:[#allocation3 + $0x20] sm:$0xff] (%p274_p11)  }
  0x72   : > { %s270_s26 = scalar_lea.vmem %s1719_s3, %s1571_s7  ;;  %346 = vst [vmem:[#allocation2 + $0x10] sm:$0xff] (%p274_p11), %v1160_v2  ;;  %347 = vst [vmem:[#allocation2 + $0x18] sm:$0xff] (%p274_p11), %v1161_v3  ;;  %v1163_v5 = vld [vmem:[#allocation3 + $0x28] sm:$0xff] (%p274_p11)   ;;  %v1164_v6 = vld [vmem:[#allocation3 + $0x30] sm:$0xff] (%p274_p11)  }
  0x73   : > { %348 = vst [vmem:[#allocation2 + $0x20] sm:$0xff] (%p274_p11), %v1162_v4  ;;  %349 = vst [vmem:[#allocation2 + $0x28] sm:$0xff] (%p274_p11), %v1163_v5  ;;  %v1165_v7 = vld [vmem:[#allocation3 + $0x38] sm:$0xff] (%p274_p11)  }
  0x74   : > { %350 = vst [vmem:[#allocation2 + $0x30] sm:$0xff] (%p274_p11), %v1164_v6  ;;  %351 = vst [vmem:[#allocation2 + $0x38] sm:$0xff] (%p274_p11), %v1165_v7 }
  0x78 PF: > { %p352_p0 = scmp.lt.s32.totalorder %s1348_s18, 0  ;;  %s353_s22 = ssub.s32 0, %s1348_s18  ;;  %v1166_v8 = vld [vmem:[#allocation6] sm:$0xff]   ;;  %v1175_v10 = vld [vmem:[%s1562_s6 + $0x8] sm:$0xff]   ;;  %v1176_v13 = vld [vmem:[%s1562_s6 + $0x10] sm:$0xff]  }
  0x79   : > { %s936_s28 = smin.u32 %s1348_s18, %s353_s22  ;;  %1023 = vmatprep.mubr.bf16.mxu0 %v1166_v8  ;;  %v1174_v9 = vld [vmem:[%s1562_s6] sm:$0xff]   ;;  %v1177_v15 = vld [vmem:[%s1562_s6 + $0x18] sm:$0xff]   ;;  %v1179_v19 = vld [vmem:[%s1562_s6 + $0x28] sm:$0xff]   ;;  %p712_p10 = scmp.eq.s32.totalorder %s1348_s18, 2 }
  0x7a   : > { %s355_s29 = sand.u32 1, %s936_s28   ;;  %1039 = vmatprep.subr.bf16.mxu1 %v1174_v9  ;;  %v1178_v17 = vld [vmem:[%s1562_s6 + $0x20] sm:$0xff]   ;;  %v1180_v21 = vld [vmem:[%s1562_s6 + $0x30] sm:$0xff]   ;;  %v1167_v24 = vld [vmem:[#allocation6 + $0x8] sm:$0xff]  }
  0x7b   : > { %s356_s24 = ssub.s32 0, %s355_s29  ;;  %1040 = vmatpush3.bf16.msra.mxu1 %v1174_v9  ;;  %v1168_v25 = vld [vmem:[#allocation6 + $0x10] sm:$0xff]   ;;  %v1169_v26 = vld [vmem:[#allocation6 + $0x18] sm:$0xff]   ;;  %v1170_v27 = vld [vmem:[#allocation6 + $0x20] sm:$0xff]  }
  0x7c   : > { %s1746_s24 = smov (!%p352_p0, %s356_s24), %s355_s29  ;;  %1041 = vmatprep.subr.bf16.mxu1 %v1175_v10  ;;  %v1171_v28 = vld [vmem:[#allocation6 + $0x28] sm:$0xff]   ;;  %v1172_v29 = vld [vmem:[#allocation6 + $0x30] sm:$0xff]   ;;  %v1173_v30 = vld [vmem:[#allocation6 + $0x38] sm:$0xff]  }
  0x7d   : > { %p938_p3 = scmp.lt.s32.totalorder %s1746_s24, 0  ;;  %s362_s30 = sadd.s32 2, %s1746_s24  ;;  %v1181_v31 = vld [vmem:[%s1562_s6 + $0x38] sm:$0xff]   ;;  %v1607_v56 = vld [vmem:[%s270_s26] ss:$0 sm:$0xff] }
  0x7e   : > { %s729_s5 = scalar_select %p712_p10, 1, 0 }
  0x7f   : > { %s1748_s30 = smov (!%p938_p3, %s362_s30), %s1746_s24  ;;  %1042 = vmatpush3.bf16.msra.mxu1 %v1175_v10 }
  0x80   : > { %s974_s13 = sshll.u32 %s1748_s30, 6  ;;  %1043 = vmatprep.subr.bf16.mxu1 %v1176_v13  ;;  %v730_v57 = vstv %s729_s5  ;;  %p958_p12 = scmp.ne.s32.totalorder %s1748_s30, 0 }
  0x81   : > { %s1585_s14 = scalar_lea.vmem [#allocation2], %s974_s13  ;;  %vm1610_vm0 = vcmp.eq.s32.totalorder %v730_v57, 1 }
  0x82   : > { %v367_v11 = vld [vmem:[%s1585_s14] sm:$0xff]  ;;  %v368_v12 = vld [vmem:[%s1585_s14 + $0x8] sm:$0xff]  ;;  %v369_v14 = vld [vmem:[%s1585_s14 + $0x10] sm:$0xff] }
  0x83   : > { %1007 = vmatprep.subr.bf16.mxu0 %v367_v11  ;;  %v370_v16 = vld [vmem:[%s1585_s14 + $0x18] sm:$0xff]  ;;  %1044 = vmatpush3.bf16.msra.mxu1 %v1176_v13  ;;  %v371_v18 = vld [vmem:[%s1585_s14 + $0x20] sm:$0xff]  ;;  %v372_v20 = vld [vmem:[%s1585_s14 + $0x28] sm:$0xff] }
  0x84   : > { %1008 = vmatpush3.bf16.msra.mxu0 %v367_v11  ;;  %1045 = vmatprep.subr.bf16.mxu1 %v1177_v15  ;;  %v373_v22 = vld [vmem:[%s1585_s14 + $0x30] sm:$0xff]  ;;  %v374_v23 = vld [vmem:[%s1585_s14 + $0x38] sm:$0xff] }
  0x85   : > { %1009 = vmatprep.subr.bf16.mxu0 %v368_v12 }
  0x87   : > { %1046 = vmatpush3.bf16.msra.mxu1 %v1177_v15 }
  0x88   : > { %1010 = vmatpush3.bf16.msra.mxu0 %v368_v12  ;;  %1047 = vmatprep.subr.bf16.mxu1 %v1178_v17 }
  0x89   : > { %1011 = vmatprep.subr.bf16.mxu0 %v369_v14 }
  0x8b   : > { %1048 = vmatpush3.bf16.msra.mxu1 %v1178_v17 }
  0x8c   : > { %1012 = vmatpush3.bf16.msra.mxu0 %v369_v14  ;;  %1049 = vmatprep.subr.bf16.mxu1 %v1179_v19 }
  0x8d   : > { %1013 = vmatprep.subr.bf16.mxu0 %v370_v16 }
  0x8f   : > { %1050 = vmatpush3.bf16.msra.mxu1 %v1179_v19 }
  0x90   : > { %1014 = vmatpush3.bf16.msra.mxu0 %v370_v16  ;;  %1051 = vmatprep.subr.bf16.mxu1 %v1180_v21 }
  0x91   : > { %1015 = vmatprep.subr.bf16.mxu0 %v371_v18 }
  0x93   : > { %1052 = vmatpush3.bf16.msra.mxu1 %v1180_v21 }
  0x94   : > { %1016 = vmatpush3.bf16.msra.mxu0 %v371_v18  ;;  %1053 = vmatprep.subr.bf16.mxu1 %v1181_v31 }
  0x95   : > { %1017 = vmatprep.subr.bf16.mxu0 %v372_v20 }
  0x97   : > { %1054 = vmatpush3.bf16.msra.mxu1 %v1181_v31 }
  0x98   : > { %1018 = vmatpush3.bf16.msra.mxu0 %v372_v20 }
  0x99   : > { %1019 = vmatprep.subr.bf16.mxu0 %v373_v22 }
  0x9c   : > { %1020 = vmatpush3.bf16.msra.mxu0 %v373_v22 }
  0x9d   : > { %1021 = vmatprep.subr.bf16.mxu0 %v374_v23 }
  0xa0   : > { %1022 = vmatpush3.bf16.msra.mxu0 %v374_v23 }
  0xa3   : > { %1024 = vmatmul.mubr.bf16.vlgmr.msra.gmra.mrb[0].mxu0 %v1167_v24 }
  0xa4   : > { %1027 = vmatprep.mubr.bf16.mxu0 %v1168_v25 }
  0xab   : > { %1028 = vmatmul.mubr.bf16.gmra.mrb[4].mxu0 %v1169_v26 }
  0xac   : > { %1031 = vmatprep.mubr.bf16.mxu0 %v1170_v27 }
  0xb3   : > { %1032 = vmatmul.mubr.bf16.gmra.mrb[8].mxu0 %v1171_v28 }
  0xb4   : > { %1035 = vmatprep.mubr.bf16.mxu0 %v1172_v29 }
  0xbb   : > { %1036 = vmatmul.mubr.bf16.gmra.mrb[12].mxu0 %v1173_v30 }
 0x176   : > { %v1025_v32 = vpop.f32.mrb[0].mxu0 }
 0x177   : > { %v473_v33 = vpop.f32.mrb[1].mxu0 }
 0x178   : > { %v1026_v34 = vpop.f32.mrb[2].mxu0 }
 0x179   : > { %v537_v35 = vpack.c.bf16 %v1026_v34, %v1025_v32  ;;  %v476_v36 = vpop.f32.mrb[3].mxu0 }
 0x17a   : > { %v536_v37 = vpack.c.bf16 %v476_v36, %v473_v33 }
 0x17c   : > { %1055 = vmatprep.mubr.bf16.mxu1 %v536_v37 }
 0x17d   : > { %1056 = vmatmul.mubr.bf16.vlgmr.msra.gmra.mrb[0].mxu1 %v537_v35 }
 0x17e   : > { %v1029_v38 = vpop.f32.mrb[4].mxu0 }
 0x17f   : > { %v489_v39 = vpop.f32.mrb[5].mxu0 }
 0x180   : > { %v1030_v40 = vpop.f32.mrb[6].mxu0 }
 0x181   : > { %v539_v41 = vpack.c.bf16 %v1030_v40, %v1029_v38  ;;  %v492_v42 = vpop.f32.mrb[7].mxu0 }
 0x182   : > { %v538_v43 = vpack.c.bf16 %v492_v42, %v489_v39 }
 0x184   : > { %1059 = vmatprep.mubr.bf16.mxu1 %v538_v43 }
 0x185   : > { %1060 = vmatmul.mubr.bf16.gmra.mrb[4].mxu1 %v539_v41 }
 0x186   : > { %v1033_v44 = vpop.f32.mrb[8].mxu0 }
 0x187   : > { %v505_v45 = vpop.f32.mrb[9].mxu0 }
 0x188   : > { %v1034_v46 = vpop.f32.mrb[10].mxu0 }
 0x189   : > { %v541_v47 = vpack.c.bf16 %v1034_v46, %v1033_v44  ;;  %v508_v48 = vpop.f32.mrb[11].mxu0 }
 0x18a   : > { %v540_v49 = vpack.c.bf16 %v508_v48, %v505_v45 }
 0x18c   : > { %1063 = vmatprep.mubr.bf16.mxu1 %v540_v49 }
 0x18d   : > { %1064 = vmatmul.mubr.bf16.gmra.mrb[8].mxu1 %v541_v47 }
 0x18e   : > { %v1037_v50 = vpop.f32.mrb[12].mxu0 }
 0x18f   : > { %v521_v51 = vpop.f32.mrb[13].mxu0 }
 0x190   : > { %v1038_v52 = vpop.f32.mrb[14].mxu0 }
 0x191   : > { %v543_v53 = vpack.c.bf16 %v1038_v52, %v1037_v50  ;;  %v524_v54 = vpop.f32.mrb[15].mxu0 }
 0x192   : > { %v542_v55 = vpack.c.bf16 %v524_v54, %v521_v51 }
 0x194   : > { %1067 = vmatprep.mubr.bf16.mxu1 %v542_v55 }
 0x195   : > { %1068 = vmatmul.mubr.bf16.gmra.mrb[12].mxu1 %v543_v53 }
 0x250   : > { %v1057_v58 = vpop.f32.mrb[0].mxu1 }
 0x251   : > { %v658_v59 = vadd.f32 %v1057_v58, %v1607_v56  ;;  %v649_v60 = vpop.f32.mrb[1].mxu1 }
 0x252   : > { %v650_v62 = vadd.f32 %v1607_v56, %v649_v60  ;;  %v1058_v63 = vpop.f32.mrb[2].mxu1 }
 0x253   : > { %v715_v0 = vmax.f32 %v658_v59, 0.0  ;;  %v661_v1 = vadd.f32 %v1058_v63, %v1607_v56  ;;  %v652_v2 = vpop.f32.mrb[3].mxu1 }
 0x254   : > { %v713_v3 = vmax.f32 %v650_v62, 0.0  ;;  %v653_v4 = vadd.f32 %v1607_v56, %v652_v2 }
 0x255   : > { %v734_v5 = vsel %vm1610_vm0, %v658_v59, %v715_v0  ;;  %v716_v6 = vmax.f32 %v661_v1, 0.0 }
 0x256   : > { %750 = vst [vmem:[#allocation9 + $0x10] sm:$0xff] %v734_v5  ;;  %v732_v7 = vsel %vm1610_vm0, %v650_v62, %v713_v3  ;;  %v714_v8 = vmax.f32 %v653_v4, 0.0 }
 0x257   : > { %748 = vst [vmem:[#allocation9] sm:$0xff] %v732_v7  ;;  %v735_v9 = vsel %vm1610_vm0, %v661_v1, %v716_v6 }
 0x258   : > { %751 = vst [vmem:[#allocation9 + $0x18] sm:$0xff] %v735_v9  ;;  %v1623_v10 = vpack.c.bf16 %v735_v9, %v734_v5  ;;  %v733_v11 = vsel %vm1610_vm0, %v653_v4, %v714_v8  ;;  %v1061_v12 = vpop.f32.mrb[4].mxu1 }
 0x259   : > { %749 = vst [vmem:[#allocation9 + $0x8] sm:$0xff] %v733_v11  ;;  %v1627_v13 = vpack.c.bf16 %v733_v11, %v732_v7  ;;  %v674_v14 = vadd.f32 %v1061_v12, %v1607_v56  ;;  %v665_v15 = vpop.f32.mrb[5].mxu1 }
 0x25a   : > { %v666_v16 = vadd.f32 %v1607_v56, %v665_v15  ;;  %v1062_v17 = vpop.f32.mrb[6].mxu1  ;;  %960 = vst [vmem:[#allocation2 + $0x48] sm:$0xff] (!%p958_p12), %v1623_v10 }
 0x25b   : > { %v719_v18 = vmax.f32 %v674_v14, 0.0  ;;  %v677_v19 = vadd.f32 %v1062_v17, %v1607_v56  ;;  %v668_v20 = vpop.f32.mrb[7].mxu1  ;;  %959 = vst [vmem:[#allocation2 + $0x40] sm:$0xff] (!%p958_p12), %v1627_v13 }
 0x25c   : > { %v717_v21 = vmax.f32 %v666_v16, 0.0  ;;  %v669_v22 = vadd.f32 %v1607_v56, %v668_v20 }
 0x25d   : > { %v738_v23 = vsel %vm1610_vm0, %v674_v14, %v719_v18  ;;  %v720_v24 = vmax.f32 %v677_v19, 0.0 }
 0x25e   : > { %754 = vst [vmem:[#allocation9 + $0x30] sm:$0xff] %v738_v23  ;;  %v736_v25 = vsel %vm1610_vm0, %v666_v16, %v717_v21  ;;  %v718_v26 = vmax.f32 %v669_v22, 0.0 }
 0x25f   : > { %752 = vst [vmem:[#allocation9 + $0x20] sm:$0xff] %v736_v25  ;;  %v739_v27 = vsel %vm1610_vm0, %v677_v19, %v720_v24 }
 0x260   : > { %755 = vst [vmem:[#allocation9 + $0x38] sm:$0xff] %v739_v27  ;;  %v1639_v28 = vpack.c.bf16 %v739_v27, %v738_v23  ;;  %v737_v29 = vsel %vm1610_vm0, %v669_v22, %v718_v26  ;;  %v1065_v30 = vpop.f32.mrb[8].mxu1 }
 0x261   : > { %753 = vst [vmem:[#allocation9 + $0x28] sm:$0xff] %v737_v29  ;;  %v766_v31 = vpack.c.bf16 %v737_v29, %v736_v25  ;;  %v690_v32 = vadd.f32 %v1065_v30, %v1607_v56  ;;  %v681_v33 = vpop.f32.mrb[9].mxu1 }
 0x262   : > { %v682_v34 = vadd.f32 %v1607_v56, %v681_v33  ;;  %v1066_v35 = vpop.f32.mrb[10].mxu1  ;;  %962 = vst [vmem:[#allocation2 + $0x58] sm:$0xff] (!%p958_p12), %v1639_v28 }
 0x263   : > { %v723_v36 = vmax.f32 %v690_v32, 0.0  ;;  %v693_v37 = vadd.f32 %v1066_v35, %v1607_v56  ;;  %v684_v38 = vpop.f32.mrb[11].mxu1  ;;  %961 = vst [vmem:[#allocation2 + $0x50] sm:$0xff] (!%p958_p12), %v766_v31 }
 0x264   : > { %v721_v39 = vmax.f32 %v682_v34, 0.0  ;;  %v685_v40 = vadd.f32 %v1607_v56, %v684_v38 }
 0x265   : > { %v742_v41 = vsel %vm1610_vm0, %v690_v32, %v723_v36  ;;  %v724_v42 = vmax.f32 %v693_v37, 0.0 }
 0x266   : > { %758 = vst [vmem:[#allocation9 + $0x50] sm:$0xff] %v742_v41  ;;  %v740_v43 = vsel %vm1610_vm0, %v682_v34, %v721_v39  ;;  %v722_v44 = vmax.f32 %v685_v40, 0.0 }
 0x267   : > { %756 = vst [vmem:[#allocation9 + $0x40] sm:$0xff] %v740_v43  ;;  %v743_v45 = vsel %vm1610_vm0, %v693_v37, %v724_v42 }
 0x268   : > { %759 = vst [vmem:[#allocation9 + $0x58] sm:$0xff] %v743_v45  ;;  %v769_v46 = vpack.c.bf16 %v743_v45, %v742_v41  ;;  %v741_v47 = vsel %vm1610_vm0, %v685_v40, %v722_v44  ;;  %v1069_v48 = vpop.f32.mrb[12].mxu1 }
 0x269   : > { %757 = vst [vmem:[#allocation9 + $0x48] sm:$0xff] %v741_v47  ;;  %v768_v49 = vpack.c.bf16 %v741_v47, %v740_v43  ;;  %v706_v50 = vadd.f32 %v1069_v48, %v1607_v56  ;;  %v697_v51 = vpop.f32.mrb[13].mxu1 }
 0x26a   : > { %v698_v52 = vadd.f32 %v1607_v56, %v697_v51  ;;  %v1070_v53 = vpop.f32.mrb[14].mxu1  ;;  %964 = vst [vmem:[#allocation2 + $0x68] sm:$0xff] (!%p958_p12), %v769_v46 }
 0x26b   : > { %v727_v54 = vmax.f32 %v706_v50, 0.0  ;;  %v709_v55 = vadd.f32 %v1070_v53, %v1607_v56  ;;  %v700_v57 = vpop.f32.mrb[15].mxu1  ;;  %775 = sbr.rel (%p958_p12) target bundleno = 628 (0x274), region = 56  ;;  %963 = vst [vmem:[#allocation2 + $0x60] sm:$0xff] (!%p958_p12), %v768_v49 }
 0x26c   : > { %v725_v58 = vmax.f32 %v698_v52, 0.0  ;;  %v701_v59 = vadd.f32 %v1607_v56, %v700_v57 }
 0x26d   : > { %v746_v60 = vsel %vm1610_vm0, %v706_v50, %v727_v54  ;;  %v728_v62 = vmax.f32 %v709_v55, 0.0 }
 0x26e   : > { %762 = vst [vmem:[#allocation9 + $0x70] sm:$0xff] %v746_v60  ;;  %v744_v63 = vsel %vm1610_vm0, %v698_v52, %v725_v58  ;;  %v726_v0 = vmax.f32 %v701_v59, 0.0 }
 0x26f   : > { %760 = vst [vmem:[#allocation9 + $0x60] sm:$0xff] %v744_v63  ;;  %v747_v1 = vsel %vm1610_vm0, %v709_v55, %v728_v62 }
 0x270   : > { %763 = vst [vmem:[#allocation9 + $0x78] sm:$0xff] %v747_v1  ;;  %v771_v2 = vpack.c.bf16 %v747_v1, %v746_v60  ;;  %v745_v3 = vsel %vm1610_vm0, %v701_v59, %v726_v0 }
 0x271   : > { %761 = vst [vmem:[#allocation9 + $0x68] sm:$0xff] %v745_v3  ;;  %v770_v56 = vpack.c.bf16 %v745_v3, %v744_v63 }
 0x272   : > { %966 = vst [vmem:[#allocation2 + $0x78] sm:$0xff] %v771_v2 }
 0x273   : > { %965 = vst [vmem:[#allocation2 + $0x70] sm:$0xff] %v770_v56 }
 0x274 PF: > { %p967_p1 = scmp.ne.s32.totalorder %s1748_s30, 1 }
 0x275   : > { %797 = vst [vmem:[#allocation2] sm:$0xff] (!%p967_p1), %v1627_v13  ;;  %798 = vst [vmem:[#allocation2 + $0x8] sm:$0xff] (!%p967_p1), %v1623_v10 }
 0x276   : > { %792 = sbr.rel (%p967_p1) target bundleno = 637 (0x27d), region = 60  ;;  %799 = vst [vmem:[#allocation2 + $0x10] sm:$0xff] (!%p967_p1), %v766_v31  ;;  %800 = vst [vmem:[#allocation2 + $0x18] sm:$0xff] (!%p967_p1), %v1639_v28 }
 0x277   : > { %801 = vst [vmem:[#allocation2 + $0x20] sm:$0xff] (!%p967_p1), %v768_v49  ;;  %802 = vst [vmem:[#allocation2 + $0x28] sm:$0xff] (!%p967_p1), %v769_v46 }
 0x278   : > { %803 = vst [vmem:[#allocation2 + $0x30] sm:$0xff] (!%p967_p1), %v770_v56  ;;  %804 = vst [vmem:[#allocation2 + $0x38] sm:$0xff] (!%p967_p1), %v771_v2 }
 0x27d PF: > { %p1101_p2 = scmp.eq.s32.totalorder %s1420_s21, 2  ;;  %s1363_s18 = smov [#allocation9]  }
 0x27e   : > { %s814_s10 = sshll.u32 %s1363_s18, 4  ;;  %s815_s10 = int_to_ptr.vmem [resolvable:$true] %s814_s10 }
 0x27f   : > { %s1268_s11 = scalar_lea.vmem %s815_s10, 2048  ;;  %p1275_p5 = scmp.lt.s32.totalorder %s815_s10, %s815_s10 }
 0x280   : > { %p1269_p8 = scmp.ne.s32.totalorder %s815_s10, %s1268_s11  ;;  %p1276_p6 = scmp.lt.s32.totalorder %s1268_s11, %s1268_s11 }
 0x282   : > { %p1270_p13 = pnand %p1269_p8, %p1101_p2  ;;  %p1277_p7 = por %p1276_p6, %p1275_p5 }
 0x284   : > { %p1271_p4 = pneg %p1270_p13 }
 0x286   : > { %p1278_p9 = pnand %p1277_p7, %p1271_p4 }
 0x288   : > { %1281 = shalt.err (!%p1278_p9)
}
 0x289   : > { %s1282_s7 = scalar_lea.hbm %s1720_s4, 2048 }
 0x28a   : > { %p1283_p11 = scmp.ne.s32.totalorder %s1720_s4, %s1282_s7  ;;  %p1288_p10 = scmp.lt.u32.totalorder %s1282_s7, %s1720_s4 }
 0x28c   : > { %p1284_p0 = pnand %p1283_p11, %p1101_p2 }
 0x28e   : > { %p1285_p3 = pneg %p1284_p0 }
 0x290   : > { %p1290_p12 = pnand %p1288_p10, %p1285_p3 }
 0x292   : > { %1293 = shalt.err (!%p1290_p12)
}
 0x293   : > { %s1364_s28 = smov 128   ;;  %s1365_s29 = smov 8  }
 0x294   : > { %1082 = dma.vmem_to_hbm [thread:$0]  (%p1101_p2), %s815_s10, 2048, %s1720_s4, [#allocation5], %s1364_s28, %s1364_s28, %s1365_s29  }
 0x295   : > { %1331 = dma.done.wait (%p1101_p2), [#allocation5], 2048  }
 0x296   : > { %1333 = vsyncadd (%p1101_p2), [#allocation5], 4294965248 }
 0x297 PF: > { %s17_s20 = sadd.s32 1, %s1356_s20   ;;  %s1738_s15 = smov %s1340_s16 }
 0x298   : > { %p14_p1 = scmp.ge.s32.totalorder %s17_s20, 5   ;;  %s1739_s16 = smov %s1344_s17 }
 0x299   : > { %s1740_s17 = smov %s1515_s25  ;;  %s1741_s18 = smov %s1352_s19 }
 0x29a   : > { %s1742_s19 = smov %s1744_s12  ;;  %16 = sbr.rel (!%p14_p1) target bundleno = 5 (0x5), region = 100 }
 0x2a1   :  { %830 = vsyncpa [#allocation4], 1 }
 0x2a2   :  { %832 = vsyncpa [#allocation4 + $0x1], 1 }
 0x2a3   :  { %833 = vsyncpa [#allocation7], 1 }
 0x2a4   :  { %834 = vsyncpa [#allocation5], 1 }
 0x2a5   :  { %836 = vsyncpa [#allocation5 + $0x1], 1 }

</bundles_post_ra>
